<compile_context>
chip_gen: v7x
topology: tpu7x:2x2x1
jax: 0.10.0
libtpu: 0.0.40
codegen_flags: <defaults>
</compile_context>

<pallas_src>
import jax
import jax.numpy as jnp
from jax.experimental import pallas as pl
from jax.experimental.pallas import tpu as pltpu

EMB_SIZE = 512   # emb_size
H_SIZE = 512     # h_size
X_SIZE = 512     # x_size (== emb_size in this module)
Y_SIZE = 512     # y_size

_LANE = 128
_SUBLANE = 8


def _round_up(x, m):
    return (x + m - 1) // m * m


def _vmem_capacity_bytes():
    """Physical per-TensorCore VMEM (128 MiB v5e/v6e, 64 MiB v7x)."""
    try:
        info = pltpu.get_tpu_info()
        cap = getattr(info, "vmem_capacity_bytes", None)
        if cap:
            return int(cap)
    except Exception:
        pass
    return 64 << 20  # conservative fallback (v7x-sized)


# ---------------------------------------------------------------------------
# Kernel A: streaming encoder matmul   diff = |(out - tgt) @ W_enc|
# grid = (EMB tiles [parallel], K tiles [arbitrary / reduction, last])
# ---------------------------------------------------------------------------
def encoder_kernel(out_ref, tgt_ref, w_ref, emb_ref):
    k = pl.program_id(1)

    @pl.when(k == 0)
    def _():
        emb_ref[...] = jnp.zeros_like(emb_ref)

    # Encoder bias cancels in (out - tgt): form the delta on the VPU and run a
    # single MXU matmul (bf16 inputs, f32 accumulation) instead of two.
    delta = (out_ref[...] - tgt_ref[...]).astype(w_ref.dtype)
    emb_ref[...] += jnp.dot(delta, w_ref[...], preferred_element_type=jnp.float32)

    @pl.when(k == pl.num_programs(1) - 1)
    def _():
        emb_ref[...] = jnp.abs(emb_ref[...])


# ---------------------------------------------------------------------------
# Kernel B: tiny tail   diff -> dense_out1 -> out2 -> per-row KL(N(mu,std)||N(0,1))
# ---------------------------------------------------------------------------
def tail_kernel(diff_ref, w1_ref, b1_ref, w2_ref, b2_ref, kl_ref):
    z = jnp.dot(diff_ref[...], w1_ref[...],
                preferred_element_type=jnp.float32) + b1_ref[...]   # (Np, H)
    y = jnp.dot(z, w2_ref[...],
                preferred_element_type=jnp.float32) + b2_ref[...]   # (Np, Y)

    d = y.shape[1]
    mu = jnp.mean(y, axis=1, keepdims=True)                          # (Np, 1)
    var = jnp.sum((y - mu) ** 2, axis=1, keepdims=True) / (d - 1)    # unbiased (torch.std)
    # kl = -log(std) + (std^2 + mu^2)/2 - 0.5, sqrt folded into the log.
    kl = -0.5 * jnp.log(var) + 0.5 * (var + mu * mu) - 0.5
    # Lane-dense store; the wrapper reads back column 0.
    kl_ref[...] = jnp.broadcast_to(kl, kl_ref.shape)


def kl_nn_forward(output, target, params, *, weight_dtype=jnp.bfloat16,
                  tk=None, te=256):
    """output, target: (N, C, T, H, W) arrays. Returns (N,) KL values."""
    output = output.astype(jnp.float32)
    target = target.astype(jnp.float32)
    n = output.shape[0]
    out_flat = output.reshape(n, -1)    # glue: flatten NCTHW row-major
    tgt_flat = target.reshape(n, -1)
    f = out_flat.shape[1]

    w_enc, b_enc, w1, b1, w2, b2 = params
    del b_enc  # cancels exactly in (out - tgt) for the linear stand-in encoder

    vmem_cap = _vmem_capacity_bytes()
    w_bytes = jnp.dtype(weight_dtype).itemsize

    # --- generation-aware K tile for the dominant weight stream ---
    if tk is None:
        # 1/16 of physical VMEM per weight tile (x2 double-buffered still leaves
        # ample headroom): TK=8192 on 128 MiB v5e/v6e, TK=4096 on 64 MiB v7x (bf16).
        tk = (vmem_cap // 16) // (EMB_SIZE * w_bytes)
    tk = min(tk, _round_up(f, 512))
    tk = max(512, _round_up(tk, 512))

    assert EMB_SIZE % te == 0 and te % _LANE == 0

    n_pad = _round_up(max(n, _SUBLANE), _SUBLANE)
    f_pad = _round_up(f, tk)

    out_p = jnp.pad(out_flat, ((0, n_pad - n), (0, f_pad - f)))
    tgt_p = jnp.pad(tgt_flat, ((0, n_pad - n), (0, f_pad - f)))
    w_enc_p = jnp.pad(w_enc, ((0, f_pad - f), (0, 0))).astype(weight_dtype)

    nj = EMB_SIZE // te
    nk = f_pad // tk

    # Never hand v7x a 64 MiB scoped limit (that is its entire physical VMEM).
    vmem_limit = min(vmem_cap // 2, 64 << 20)

    cost = pl.CostEstimate(
        flops=2 * n_pad * f_pad * EMB_SIZE,
        transcendentals=0,
        bytes_accessed=(2 * n_pad * f_pad * 4 * nj
                        + f_pad * EMB_SIZE * w_bytes
                        + n_pad * EMB_SIZE * 4),
    )

    diff = pl.pallas_call(
        encoder_kernel,
        out_shape=jax.ShapeDtypeStruct((n_pad, EMB_SIZE), jnp.float32),
        grid_spec=pltpu.PrefetchScalarGridSpec(
            num_scalar_prefetch=0,
            grid=(nj, nk),
            in_specs=[
                pl.BlockSpec((n_pad, tk), lambda j, k: (0, k)),   # out
                pl.BlockSpec((n_pad, tk), lambda j, k: (0, k)),   # tgt
                pl.BlockSpec((tk, te), lambda j, k: (k, j)),      # w_enc (bf16)
            ],
            out_specs=pl.BlockSpec((n_pad, te), lambda j, k: (0, j)),
        ),
        compiler_params=pltpu.CompilerParams(
            dimension_semantics=("parallel", "arbitrary"),
            vmem_limit_bytes=vmem_limit,
        ),
        cost_estimate=cost,
    )(out_p, tgt_p, w_enc_p)

    vmem = pl.BlockSpec(memory_space=pltpu.MemorySpace.VMEM)
    kl = pl.pallas_call(
        tail_kernel,
        out_shape=jax.ShapeDtypeStruct((n_pad, _LANE), jnp.float32),
        in_specs=[vmem] * 5,
        out_specs=vmem,
    )(diff, w1, b1, w2, b2)

    return kl[:n, 0]


def init_params(key, in_features):
    """Deterministic synthetic parameters. Weights stored as (in, out)."""
    k = jax.random.split(key, 6)
    scale_enc = 1.0 / jnp.sqrt(in_features)
    scale_x = 1.0 / jnp.sqrt(X_SIZE)
    scale_h = 1.0 / jnp.sqrt(H_SIZE)
    w_enc = jax.random.normal(k[0], (in_features, EMB_SIZE), jnp.float32) * scale_enc
    b_enc = jax.random.normal(k[1], (1, EMB_SIZE), jnp.float32) * 0.01
    w1 = jax.random.normal(k[2], (X_SIZE, H_SIZE), jnp.float32) * scale_x
    b1 = jax.random.normal(k[3], (1, H_SIZE), jnp.float32) * 0.01
    w2 = jax.random.normal(k[4], (H_SIZE, Y_SIZE), jnp.float32) * scale_h
    b2 = jax.random.normal(k[5], (1, Y_SIZE), jnp.float32) * 0.01
    return (w_enc, b_enc, w1, b1, w2, b2)


def kl_nn_reference(output, target, params):
    """Pure-JAX f32 reference with the module's literal algebra (bias included)."""
    w_enc, b_enc, w1, b1, w2, b2 = params
    n = output.shape[0]
    o = output.astype(jnp.float32).reshape(n, -1)
    t = target.astype(jnp.float32).reshape(n, -1)
    oe = o @ w_enc + b_enc
    te = t @ w_enc + b_enc
    diff = jnp.abs(oe - te)
    z = diff @ w1 + b1
    y = z @ w2 + b2
    mu = jnp.mean(y, axis=1)
    var = jnp.var(y, axis=1, ddof=1)
    std = jnp.sqrt(var)
    return -jnp.log(std) + 0.5 * (var + mu * mu) - 0.5


def kl_nn_matched_reference(output, target, params, weight_dtype=jnp.bfloat16):
    """Reference using the kernel's algebra/dtype policy (delta trick + bf16 weight)."""
    w_enc, b_enc, w1, b1, w2, b2 = params
    n = output.shape[0]
    o = output.astype(jnp.float32).reshape(n, -1)
    t = target.astype(jnp.float32).reshape(n, -1)
    delta = (o - t).astype(weight_dtype)
    diff = jnp.abs(jnp.dot(delta, w_enc.astype(weight_dtype),
                           preferred_element_type=jnp.float32))
    z = diff @ w1 + b1
    y = z @ w2 + b2
    mu = jnp.mean(y, axis=1)
    var = jnp.var(y, axis=1, ddof=1)
    return -0.5 * jnp.log(var) + 0.5 * (var + mu * mu) - 0.5


if __name__ == "__main__":
    key = jax.random.PRNGKey(0)
    k_out, k_tgt, k_par = jax.random.split(key, 3)

    # Small video-like batch: (N, C, T, H, W) -> F = 1536 flattened features.
    N, C, T, H, W = 2, 3, 2, 16, 16
    output = jax.random.normal(k_out, (N, C, T, H, W), jnp.float32)
    target = jax.random.normal(k_tgt, (N, C, T, H, W), jnp.float32)

    params = init_params(k_par, C * T * H * W)

    # tk=512 forces a multi-step K-reduction grid (3 steps) at this toy size;
    # real video sizes use the generation-aware default tile.
    kl = kl_nn_forward(output, target, params, tk=512)
    jax.block_until_ready(kl)
    assert kl.shape == (N,)

    ref_matched = kl_nn_matched_reference(output, target, params)
    ref_f32 = kl_nn_reference(output, target, params)

    # Tight check against the dtype/algebra-matched reference, loose sanity
    # check against the full-f32 module-semantics reference (bf16 weight stream).
    assert jnp.allclose(kl, ref_matched, rtol=2e-3, atol=2e-3), (kl, ref_matched)
    assert jnp.allclose(kl, ref_f32, rtol=5e-2, atol=5e-2), (kl, ref_f32)

    print("KERNEL_OK")
</pallas_src>

<mosaic_0001>
module attributes {stable_mosaic.version = 11 : i64} {
  func.func @encoder_kernel(%arg0: i32, %arg1: i32, %arg2: memref<8x512xf32, #tpu.memory_space<vmem>>, %arg3: memref<8x512xf32, #tpu.memory_space<vmem>>, %arg4: memref<512x256xbf16, #tpu.memory_space<vmem>>, %arg5: memref<8x256xf32, #tpu.memory_space<vmem>>) attributes {dimension_semantics = [#tpu.dimension_semantics<parallel>, #tpu.dimension_semantics<arbitrary>], iteration_bounds = array<i64: 2, 3>, scalar_prefetch = 0 : i64, scratch_operands = 0 : i64, tpu.core_type = #tpu.core_type<tc>, window_params = [{transform_indices = @transform_0, window_bounds = array<i64: 8, 512>}, {transform_indices = @transform_1, window_bounds = array<i64: 8, 512>}, {transform_indices = @transform_2, window_bounds = array<i64: 512, 256>}, {transform_indices = @transform_3, window_bounds = array<i64: 8, 256>}]} {
    %c0_i32 = arith.constant 0 : i32
    %0 = arith.cmpi eq, %arg1, %c0_i32 : i32
    %1 = arith.extui %0 : i1 to i32
    %c0_i32_0 = arith.constant 0 : i32
    %2 = arith.cmpi ne, %1, %c0_i32_0 : i32
    scf.if %2 {
      %cst_11 = arith.constant 0.000000e+00 : f32
      %15 = vector.broadcast %cst_11 : f32 to vector<8x256xf32>
      %c0_12 = arith.constant 0 : index
      %c0_13 = arith.constant 0 : index
      %16 = vector.load %arg5[%c0_12, %c0_13] : memref<8x256xf32, #tpu.memory_space<vmem>>, vector<8x256xf32>
      tpu.vector_store %arg5[%c0_12, %c0_13], %15 {strides = array<i32>} : memref<8x256xf32, #tpu.memory_space<vmem>>, vector<8x256xf32>,
    } else {
    }
    %c0 = arith.constant 0 : index
    %c0_1 = arith.constant 0 : index
    %3 = vector.load %arg2[%c0, %c0_1] : memref<8x512xf32, #tpu.memory_space<vmem>>, vector<8x512xf32>
    %c0_2 = arith.constant 0 : index
    %c0_3 = arith.constant 0 : index
    %4 = vector.load %arg3[%c0_2, %c0_3] : memref<8x512xf32, #tpu.memory_space<vmem>>, vector<8x512xf32>
    %5 = arith.subf %3, %4 : vector<8x512xf32>
    %6 = arith.truncf %5 : vector<8x512xf32> to vector<8x512xbf16>
    %c0_4 = arith.constant 0 : index
    %c0_5 = arith.constant 0 : index
    %7 = vector.load %arg5[%c0_4, %c0_5] : memref<8x256xf32, #tpu.memory_space<vmem>>, vector<8x256xf32>
    %c0_6 = arith.constant 0 : index
    %c0_7 = arith.constant 0 : index
    %8 = vector.load %arg4[%c0_6, %c0_7] : memref<512x256xbf16, #tpu.memory_space<vmem>>, vector<512x256xbf16>
    %cst = arith.constant dense<0.000000e+00> : vector<8x256xf32>
    %9 = tpu.matmul %6, %8, %cst {dimension_numbers = #tpu.dot_dimension_numbers<[1], [0], [0], [1], [0, 0, 1, 1], [], []>} : vector<8x512xbf16>, vector<512x256xbf16>, vector<8x256xf32> -> vector<8x256xf32>
    %10 = arith.addf %7, %9 : vector<8x256xf32>
    %c0_8 = arith.constant 0 : index
    %c0_9 = arith.constant 0 : index
    %11 = vector.load %arg5[%c0_8, %c0_9] : memref<8x256xf32, #tpu.memory_space<vmem>>, vector<8x256xf32>
    tpu.vector_store %arg5[%c0_8, %c0_9], %10 {strides = array<i32>} : memref<8x256xf32, #tpu.memory_space<vmem>>, vector<8x256xf32>,
    %c2_i32 = arith.constant 2 : i32
    %12 = arith.cmpi eq, %arg1, %c2_i32 : i32
    %13 = arith.extui %12 : i1 to i32
    %c0_i32_10 = arith.constant 0 : i32
    %14 = arith.cmpi ne, %13, %c0_i32_10 : i32
    scf.if %14 {
      %c0_11 = arith.constant 0 : index
      %c0_12 = arith.constant 0 : index
      %15 = vector.load %arg5[%c0_11, %c0_12] : memref<8x256xf32, #tpu.memory_space<vmem>>, vector<8x256xf32>
      %16 = math.absf %15 : vector<8x256xf32>
      %c0_13 = arith.constant 0 : index
      %c0_14 = arith.constant 0 : index
      %17 = vector.load %arg5[%c0_13, %c0_14] : memref<8x256xf32, #tpu.memory_space<vmem>>, vector<8x256xf32>
      tpu.vector_store %arg5[%c0_13, %c0_14], %16 {strides = array<i32>} : memref<8x256xf32, #tpu.memory_space<vmem>>, vector<8x256xf32>,
    } else {
    }
    return
  }
  func.func @transform_0(%arg0: i32, %arg1: i32) -> (i32, i32) {
    %c0_i32 = arith.constant 0 : i32
    %c0_i32_0 = arith.constant 0 : i32
    return %c0_i32, %arg1 : i32, i32
  }
  func.func @transform_1(%arg0: i32, %arg1: i32) -> (i32, i32) {
    %c0_i32 = arith.constant 0 : i32
    %c0_i32_0 = arith.constant 0 : i32
    return %c0_i32, %arg1 : i32, i32
  }
  func.func @transform_2(%arg0: i32, %arg1: i32) -> (i32, i32) {
    %c0_i32 = arith.constant 0 : i32
    return %arg1, %arg0 : i32, i32
  }
  func.func @transform_3(%arg0: i32, %arg1: i32) -> (i32, i32) {
    %c0_i32 = arith.constant 0 : i32
    %c0_i32_0 = arith.constant 0 : i32
    return %c0_i32, %arg0 : i32, i32
  }
}

</mosaic_0001>

<bundles_post_ra>
// kernel: tpu_custom_call.1
= control target key start
LH: loop header
LB: loop body
LE: loop exit
PB: predicated region body
PF: predicated region fallthrough
CT: control target
= control target key end

     0   :  { %s2013_s0 = inlined_call_operand.hbm [shape: f32[8,1536], index: 0, kind: input, shape index: {}]   ;;  %s2014_s1 = inlined_call_operand.hbm [shape: f32[8,1536], index: 1, kind: input, shape index: {}]   ;;  %s2015_s2 = inlined_call_operand.hbm [shape: bf16[1536,512], index: 2, kind: input, shape index: {}]   ;;  %s2016_s3 = inlined_call_operand.hbm [shape: f32[8,512], index: 3, kind: output, shape index: {}]  }
   0x1   :  { %2033 = sst [smem:[#allocation24_spill]] %s2014_s1 }
   0x2   :  { %2034 = sst [smem:[#allocation25_spill]] %s2016_s3 }
   0x3   :  { %8 = vsyncpa [#allocation3], 0 }
   0x4   :  { %10 = vsyncpa [#allocation3 + $0x1], 0 }
   0x5   :  { %11 = vsyncpa [#allocation6], 0 }
   0x6   :  { %13 = vsyncpa [#allocation6 + $0x1], 0 }
   0x7   :  { %14 = vsyncpa [#allocation4], 0 }
   0x8   :  { %16 = vsyncpa [#allocation4 + $0x1], 0  ;;  %s1535_s12 = smov 0   ;;  %s1537_s13 = smov 0  }
   0x9   :  { %s1539_s14 = smov 0   ;;  %s1541_s15 = smov 0  }
   0xa   :  { %s1543_s16 = smov 0   ;;  %s1545_s17 = smov 0  }
   0xb   :  { %s1547_s18 = smov 0   ;;  %s1549_s19 = smov 0  }
   0xc   :  { %s1551_s20 = smov 0   ;;  %s1553_s21 = smov 0  }
   0xd   :  { %s1555_s22 = smov 0   ;;  %s1557_s23 = smov 0  }
   0xe   :  { %s1559_s24 = smov 0   ;;  %s1561_s25 = smov 0  }
   0xf LB: > { %2035 = sst [smem:[#allocation13_spill]] %s1453_s12  ;;  %s1604_s26 = sadd.s32 4294967295, %s1505_s25   ;;  %s1505_s25 = sphi %s1561_s25, %s22_s25   ;;  %s1501_s24 = sphi %s1559_s24, %s2077_s24   ;;  %s1497_s23 = sphi %s1557_s23, %s2076_s23   ;;  %s1493_s22 = sphi %s1555_s22, %s2075_s22   ;;  %s1489_s21 = sphi %s1553_s21, %s2074_s21   ;;  %s1485_s20 = sphi %s1551_s20, %s2085_s20   ;;  %s1481_s19 = sphi %s1549_s19, %s2084_s19   ;;  %s1477_s18 = sphi %s1547_s18, %s2083_s18   ;;  %s1473_s17 = sphi %s1545_s17, %s2082_s17   ;;  %s1469_s16 = sphi %s1543_s16, %s2081_s16   ;;  %s1465_s15 = sphi %s1541_s15, %s2080_s15   ;;  %s1461_s14 = sphi %s1539_s14, %s2071_s14   ;;  %s1457_s13 = sphi %s1537_s13, %s2079_s13   ;;  %s1453_s12 = sphi %s1535_s12, %s2078_s12  }
  0x10   : > { %2036 = sst [smem:[#allocation14_spill]] %s1461_s14  ;;  %s931_s27 = sadd.s32 4294967294, %s1505_s25  }
  0x11   : > { %2037 = sst [smem:[#allocation15_spill]] %s1497_s23  ;;  %s31_s28 = sadd.s32 1, %s1497_s23 }
  0x12   : > { %2038 = sst [smem:[#allocation16_spill]] %s1501_s24  ;;  %s34_s29 = sadd.s32 1, %s1501_s24 }
  0x13   : > { %p32_p0 = scmp.ge.s32.totalorder %s31_s28, 3  ;;  %s41_s30 = sadd.s32 1, %s1485_s20 }
  0x14   : > { %p48_p1 = scmp.ne.s32.totalorder %s1485_s20, %s1481_s19  ;;  %p49_p2 = scmp.eq.s32.totalorder %s1505_s25, 0 }
  0x15   : > { %s2087_s28 = smov (%p32_p0, %s31_s28), 0  ;;  %s2089_s29 = smov (!%p32_p0, %s34_s29), %s1501_s24 }
  0x16   : > { %2039 = sst [smem:[#allocation17_spill]] %s2087_s28  ;;  %s38_s4 = ssub.s32 %s1497_s23, %s2087_s28 }
  0x17   : > { %p1620_p3 = por %p49_p2, %p48_p1  ;;  %p36_p4 = scmp.ge.s32.totalorder %s2089_s29, 2 }
  0x18   : > { %p39_p5 = scmp.eq.s32.totalorder %s38_s4, 0  ;;  %p54_p6 = scmp.ne.s32.totalorder %s1481_s19, %s1477_s18 }
  0x19   : > { %p55_p7 = scmp.eq.s32.totalorder %s1604_s26, 0  ;;  %s2091_s29 = smov (%p36_p4, %s2089_s29), 0 }
  0x1a   : > { %2041 = sst [smem:[#allocation18_spill]] %s2091_s29  ;;  %s91_s8 = ssub.s32 %s1501_s24, %s2091_s29 }
  0x1b   : > { %s1629_s6 = scalar_select %p39_p5, %s1485_s20, %s41_s30  }
  0x1c   : > { %p1633_p8 = por %p55_p7, %p54_p6  ;;  %s92_s9 = sor.u32 %s91_s8, %s38_s4 }
  0x1d   : > { %2042 = sst [smem:[#allocation19_spill]] %s1629_s6  ;;  %s95_s10 = sadd.s32 1, %s1473_s17 }
  0x1e   : > { %s2043_s7 = scalar_select %p1633_p8, 1, 0 }
  0x1f   : > { %p93_p9 = scmp.eq.s32.totalorder %s92_s9, 0  ;;  %p102_p10 = scmp.ne.s32.totalorder %s1473_s17, %s1469_s16 }
  0x20   : > { %p108_p11 = scmp.ne.s32.totalorder %s1469_s16, %s1465_s15  ;;  %p119_p12 = scmp.eq.s32.totalorder %s91_s8, 0 }
  0x21   : > { %s1645_s11 = scalar_select %p93_p9, %s1473_s17, %s95_s10  }
  0x22   : > { %p1649_p13 = por %p102_p10, %p49_p2  ;;  %p1655_p0 = por %p108_p11, %p55_p7 }
  0x23   : > { %2044 = sst [smem:[#allocation20_spill]] %s1645_s11  ;;  %s121_s4 = sadd.s32 1, %s1461_s14 }
  0x24   : > { %s2046_s30 = scalar_select %p1655_p0, 1, 0 }
  0x25   : > { %p131_p1 = scmp.ne.s32.totalorder %s1461_s14, %s1457_s13  ;;  %p132_p4 = scmp.eq.s32.totalorder %s1604_s26, 5 }
  0x26   : > { %s1663_s15 = scalar_select %p119_p12, %s1461_s14, %s121_s4  }
  0x27   : > { %p137_p5 = scmp.ne.s32.totalorder %s1457_s13, %s1453_s12  ;;  %p138_p6 = scmp.eq.s32.totalorder %s931_s27, 5 }
  0x28   : > { %2047 = sst [smem:[#allocation21_spill]] %s1663_s15  ;;  %p1670_p2 = por %p132_p4, %p131_p1 }
  0x29   : > { %p2027_p9 = scmp.lt.s32.totalorder %s1505_s25, 6  ;;  %p1675_p10 = por %p138_p6, %p137_p5 }
  0x2a   : > { %s2048_s8 = scalar_select %p1670_p2, 1, 0 }
  0x2b   : > { %s2050_s9 = scalar_select %p1675_p10, 1, 0 }
  0x2c   : > { %2049 = sst [smem:[#allocation22_spill]] %s2048_s8  ;;  %s2019_s10 = sand.u32 1, %s1485_s20  }
  0x2d   : > { %2051 = sst [smem:[#allocation23_spill]] %s2050_s9  ;;  %s1682_s29 = sshll.u32 %s2019_s10, 5 }
  0x2e   : > { %s2024_s4 = sshll.u32 %s1497_s23, 9  ;;  %p1689_p7 = pnand %p2027_p9, %p1620_p3 }
  0x2f   : > { %s177_s27 = sand.u32 1, %s1505_s25   ;;  %s2053_s1 = sld [smem:[#allocation24_spill]] }
  0x30   : > { %s181_s10 = scalar_lea.vmem [#allocation5], %s1682_s29  ;;  %s942_s14 = sshll.u32 %s1501_s24, 1 }
  0x31   : > { %s189_s5 = sshll.u32 %s181_s10, 4  ;;  %s1023_s9 = sshll.u32 %s1497_s23, 8  ;;  %s1703_s5 = int_to_ptr.vmem [resolvable:$true] %s189_s5 }
  0x32   : > { %s1706_s12 = scalar_lea.sflag [#allocation6], %s177_s27  ;;  %p1263_p11 = pneg %p1689_p7 }
  0x35   : > { %s1699_s15 = scalar_lea.hbm %s2053_s1, %s2024_s4  ;;  %s1266_s4 = scalar_lea.hbm %s2053_s1, 1536 }
  0x36   : > { %s1261_s3 = scalar_lea.hbm %s1699_s15, 512  ;;  %p1267_p4 = scmp.lt.u32.totalorder %s1699_s15, %s2053_s1 }
  0x37   : > { %p1262_p3 = scmp.ne.s32.totalorder %s1699_s15, %s1261_s3  ;;  %p1268_p5 = scmp.lt.u32.totalorder %s1266_s4, %s1261_s3 }
  0x38   : > { %p1270_p9 = scmp.lt.u32.totalorder %s1261_s3, %s1699_s15 }
  0x39   : > { %p1264_p12 = pnand %p1263_p11, %p1262_p3  ;;  %p1269_p6 = por %p1268_p5, %p1267_p4 }
  0x3b   : > { %p1265_p1 = pneg %p1264_p12  ;;  %p1271_p10 = por %p1270_p9, %p1269_p6 }
  0x3d   : > { %p1272_p2 = pnand %p1271_p10, %p1265_p1 }
  0x3f   : > { %1275 = shalt.err (!%p1272_p2)
}
  0x40   : > { %s1276_s27 = scalar_lea.vmem %s1703_s5, 512  ;;  %s1507_s6 = smov [#allocation5]  }
  0x41   : > { %p1277_p3 = scmp.ne.s32.totalorder %s1703_s5, %s1276_s27  ;;  %s1281_s11 = sshll.u32 %s1507_s6, 4  ;;  %s1282_s11 = int_to_ptr.vmem [resolvable:$false] %s1281_s11 }
  0x42   : > { %s1283_s8 = scalar_lea.vmem %s1282_s11, 1024  ;;  %p1284_p8 = scmp.lt.s32.totalorder %s1703_s5, %s1282_s11 }
  0x43   : > { %p1279_p12 = pnand %p1277_p3, %p1263_p11  ;;  %p1285_p4 = scmp.lt.s32.totalorder %s1283_s8, %s1276_s27 }
  0x45   : > { %p1280_p0 = pneg %p1279_p12  ;;  %p1286_p5 = por %p1285_p4, %p1284_p8 }
  0x47   : > { %p1287_p9 = pnand %p1286_p5, %p1280_p0 }
  0x49   : > { %1290 = shalt.err (!%p1287_p9)
}
  0x4a   : > { %1039 = dma.hbm_to_vmem [thread:$0]  (!%p1689_p7), %s1699_s15, 512, %s1703_s5, %s1706_s12  }
  0x4b   : > { %s207_s3 = sadd.s32 %s1023_s9, %s942_s14  ;;  %p2054_p8 = scmp.lt.s32.totalorder %s1505_s25, 6 }
  0x4c   : > { %s944_s10 = sshll.u32 %s207_s3, 6  ;;  %p945_p2 = scmp.ge.s32.totalorder %s1505_s25, 1 }
  0x4d   : > { %p1742_p0 = pnand %p2054_p8, %p1649_p13  ;;  %s1750_s11 = scalar_lea.hbm %s2015_s2, %s944_s10 }
  0x4e   : > { %p218_p10 = scmp.lt.s32.totalorder %s1505_s25, 7  ;;  %s2057_s5 = sshll.u32 %s1497_s23, 9 }
  0x4f   : > { %s1762_s9 = scalar_lea.hbm %s2013_s0, %s2057_s5  ;;  %s162_s8 = scalar_lea.vmem [#allocation2], %s1682_s29 }
  0x50   : > { %p1753_p1 = pnand %p945_p2, %p218_p10  ;;  %s170_s3 = sshll.u32 %s162_s8, 4  ;;  %s1765_s3 = int_to_ptr.vmem [resolvable:$true] %s170_s3 }
  0x51   : > { %s198_s10 = sand.u32 1, %s1473_s17   ;;  %s2058_s27 = sand.u32 1, %s1485_s20  }
  0x52   : > { %s2056_s15 = scalar_select %p1753_p1, 1, 0 }
  0x53   : > { %s159_s6 = scalar_lea.sflag [#allocation3], %s2058_s27  ;;  %s1291_s1 = scalar_lea.hbm %s1762_s9, 512 }
  0x54   : > { %p1292_p13 = scmp.ne.s32.totalorder %s1762_s9, %s1291_s1  ;;  %s1296_s18 = scalar_lea.hbm %s2013_s0, 1536 }
  0x55   : > { %p1297_p12 = scmp.lt.u32.totalorder %s1762_s9, %s2013_s0  ;;  %p1298_p4 = scmp.lt.u32.totalorder %s1296_s18, %s1291_s1 }
  0x56   : > { %p1294_p6 = pnand %p1292_p13, %p1263_p11  ;;  %p1300_p9 = scmp.lt.u32.totalorder %s1291_s1, %s1762_s9 }
  0x57   : > { %p1299_p5 = por %p1298_p4, %p1297_p12 }
  0x58   : > { %p1295_p3 = pneg %p1294_p6 }
  0x59   : > { %p1301_p8 = por %p1300_p9, %p1299_p5 }
  0x5b   : > { %p1302_p2 = pnand %p1301_p8, %p1295_p3 }
  0x5d   : > { %1305 = shalt.err (!%p1302_p2)
}
  0x5e   : > { %s1306_s29 = scalar_lea.vmem %s1765_s3, 512  ;;  %s1508_s8 = smov [#allocation2]  }
  0x5f   : > { %p1307_p10 = scmp.ne.s32.totalorder %s1765_s3, %s1306_s29  ;;  %s1311_s27 = sshll.u32 %s1508_s8, 4  ;;  %s1312_s27 = int_to_ptr.vmem [resolvable:$false] %s1311_s27 }
  0x60   : > { %s1313_s23 = scalar_lea.vmem %s1312_s27, 1024  ;;  %p1314_p1 = scmp.lt.s32.totalorder %s1765_s3, %s1312_s27 }
  0x61   : > { %p1309_p13 = pnand %p1307_p10, %p1263_p11  ;;  %p1315_p12 = scmp.lt.s32.totalorder %s1313_s23, %s1306_s29 }
  0x63   : > { %p1310_p6 = pneg %p1309_p13  ;;  %p1316_p4 = por %p1315_p12, %p1314_p1 }
  0x65   : > { %p1317_p5 = pnand %p1316_p4, %p1310_p6 }
  0x67   : > { %1320 = shalt.err (!%p1317_p5)
}
  0x68   : > { %1036 = dma.hbm_to_vmem [thread:$0]  (!%p1689_p7), %s1762_s9, 512, %s1765_s3, %s159_s6  }
  0x69   : > { %s940_s1 = sshll.u32 %s198_s10, 9  ;;  %s1321_s5 = scalar_lea.hbm %s1750_s11, 8192 }
  0x6a   : > { %s200_s24 = scalar_lea.vmem [#allocation7], %s940_s1  ;;  %p1322_p11 = scmp.ne.s32.totalorder %s1750_s11, %s1321_s5 }
  0x6b   : > { %s210_s14 = sshll.u32 %s200_s24, 4  ;;  %p1323_p1 = pneg %p1742_p0  ;;  %s1795_s14 = int_to_ptr.vmem [resolvable:$true] %s210_s14 }
  0x6c   : > { %s1326_s29 = scalar_lea.hbm %s2015_s2, 49152  ;;  %p1327_p7 = scmp.lt.u32.totalorder %s1750_s11, %s2015_s2 }
  0x6d   : > { %p1324_p3 = pnand %p1323_p1, %p1322_p11  ;;  %p1328_p8 = scmp.lt.u32.totalorder %s1326_s29, %s1321_s5 }
  0x6e   : > { %p1330_p10 = scmp.lt.u32.totalorder %s1321_s5, %s1750_s11 }
  0x6f   : > { %p1325_p9 = pneg %p1324_p3  ;;  %p1329_p2 = por %p1328_p8, %p1327_p7 }
  0x71   : > { %p1331_p13 = por %p1330_p10, %p1329_p2 }
  0x73   : > { %p1332_p6 = pnand %p1331_p13, %p1325_p9 }
  0x75   : > { %1335 = shalt.err (!%p1332_p6)
}
  0x76   : > { %s1336_s3 = scalar_lea.vmem %s1795_s14, 8192  ;;  %s1509_s10 = smov [#allocation7]  }
  0x77   : > { %p1337_p12 = scmp.ne.s32.totalorder %s1795_s14, %s1336_s3  ;;  %s1341_s6 = sshll.u32 %s1509_s10, 4  ;;  %s1342_s6 = int_to_ptr.vmem [resolvable:$false] %s1341_s6 }
  0x78   : > { %s1343_s27 = scalar_lea.vmem %s1342_s6, 16384  ;;  %p1344_p11 = scmp.lt.s32.totalorder %s1795_s14, %s1342_s6 }
  0x79   : > { %p1339_p4 = pnand %p1337_p12, %p1323_p1  ;;  %p1345_p3 = scmp.lt.s32.totalorder %s1343_s27, %s1336_s3 }
  0x7b   : > { %p1340_p5 = pneg %p1339_p4  ;;  %p1346_p7 = por %p1345_p3, %p1344_p11 }
  0x7d   : > { %p1347_p8 = pnand %p1346_p7, %p1340_p5 }
  0x7f   : > { %1350 = shalt.err (!%p1347_p8)
}
  0x80   : > { %s1510_s23 = smov 256   ;;  %s1511_s1 = smov 128  }
  0x81   : > { %s1512_s24 = smov 8   ;;  %p2059_p1 = scmp.ne.s32.totalorder %s2056_s15, 0 }
  0x82   : > { %1042 = dma.hbm_to_vmem [thread:$0]  (!%p1742_p0), %s1750_s11, 8192, %s1795_s14, %s1706_s12, %s1510_s23, %s1511_s1, %s1512_s24  }
  0x83   : > { %222 = sbr.rel (%p2059_p1) target bundleno = 476 (0x1dc), region = 32  ;;  %s224_s5 = sand.u32 (!%p2059_p1), 1, %s1481_s19  }
  0x84   : > { %s946_s28 = sshll.u32 (!%p2059_p1), %s224_s5, 5  ;;  %s225_s18 = scalar_lea.sflag (!%p2059_p1), [#allocation3], %s224_s5 }
  0x85   : > { %s1826_s29 = scalar_lea.vmem (!%p2059_p1), [#allocation2], %s946_s28  ;;  %p2060_p9 = scmp.ne.s32.totalorder (!%p2059_p1), %s2043_s7, 0 }
  0x8a   : > { %1436 = dma.done.wait (%p2060_p9), %s225_s18, 512  }
  0x8b   : > { %1438 = vsyncadd (%p2060_p9), %s225_s18, 4294966784  ;;  %s233_s8 = sand.u32 1, %s1604_s26   ;;  %s1833_s12 = scalar_lea.vmem [#allocation5], %s946_s28 }
  0x8c   : > { %s234_s4 = scalar_lea.sflag [#allocation6], %s233_s8 }
  0x8d   : > { %1440 = dma.done.wait (%p2060_p9), %s234_s4, 512  }
  0x8e   : > { %1442 = vsyncadd (%p2060_p9), %s234_s4, 4294966784  ;;  %s244_s11 = sand.u32 1, %s1469_s16   ;;  %p2061_p0 = scmp.ne.s32.totalorder %s2046_s30, 0 }
  0x8f   : > { %s948_s15 = sshll.u32 %s244_s11, 9 }
  0x90   : > { %s1840_s14 = scalar_lea.vmem [#allocation7], %s948_s15 }
  0x91   : > { %1444 = dma.done.wait (%p2061_p0), %s234_s4, 8192  }
  0x92   : > { %1446 = vsyncadd (%p2061_p0), %s234_s4, 4294959104  ;;  %s276_s26 = sand.u32 1, %s1457_s13   ;;  %p950_p2 = scmp.ne.s32.totalorder %s1489_s21, 0 }
  0x93   : > { %s949_s9 = sshll.u32 %s276_s26, 4  ;;  %v1513_v0 = vmov (!%p950_p2), 0.0  }
  0x94   : > { %s1849_s3 = scalar_lea.vmem [#allocation8], %s949_s9  ;;  %287 = sbr.rel (%p950_p2) target bundleno = 155 (0x9b), region = 48 }
  0x95   : > { %288 = vst [vmem:[%s1849_s3] sm:$0xff] (!%p950_p2), %v1513_v0  ;;  %289 = vst [vmem:[%s1849_s3 + $0x8] sm:$0xff] (!%p950_p2), %v1513_v0 }
  0x9b PF: > { %v1165_v1 = vld [vmem:[%s1840_s14 + $0x4] ss:$8 sps:$4 sm:$0xff]   ;;  %v1169_v3 = vld [vmem:[%s1840_s14] ss:$8 sps:$4 sm:$0xff]   ;;  %v1171_v5 = vld [vmem:[%s1840_s14 + $0x14] ss:$8 sps:$4 sm:$0xff]  }
  0x9c   : > { %v1167_v2 = vld [vmem:[%s1840_s14 + $0x104] ss:$8 sps:$4 sm:$0xff]   ;;  %692 = vmatprep.subr.bf16.mxu0 %v1165_v1  ;;  %v1170_v4 = vld [vmem:[%s1840_s14 + $0x100] ss:$8 sps:$4 sm:$0xff]   ;;  %v1173_v6 = vld [vmem:[%s1840_s14 + $0x114] ss:$8 sps:$4 sm:$0xff]  }
  0x9d   : > { %733 = vmatprep.subr.bf16.mxu1 %v1167_v2  ;;  %693 = vmatpush1.bf16.msra.mxu0 %v1169_v3  ;;  %v1175_v7 = vld [vmem:[%s1840_s14 + $0x10] ss:$8 sps:$4 sm:$0xff]   ;;  %v1177_v9 = vld [vmem:[%s1840_s14 + $0x24] ss:$8 sps:$4 sm:$0xff]   ;;  %v1181_v11 = vld [vmem:[%s1840_s14 + $0x20] ss:$8 sps:$4 sm:$0xff]  }
  0x9e   : > { %734 = vmatpush1.bf16.msra.mxu1 %v1170_v4  ;;  %694 = vmatprep.subr.bf16.mxu0 %v1171_v5  ;;  %v1176_v8 = vld [vmem:[%s1840_s14 + $0x110] ss:$8 sps:$4 sm:$0xff]   ;;  %v1179_v10 = vld [vmem:[%s1840_s14 + $0x124] ss:$8 sps:$4 sm:$0xff]   ;;  %v1182_v12 = vld [vmem:[%s1840_s14 + $0x120] ss:$8 sps:$4 sm:$0xff]  }
  0x9f   : > { %735 = vmatprep.subr.bf16.mxu1 %v1173_v6  ;;  %v1183_v13 = vld [vmem:[%s1840_s14 + $0x34] ss:$8 sps:$4 sm:$0xff]   ;;  %v1187_v15 = vld [vmem:[%s1840_s14 + $0x30] ss:$8 sps:$4 sm:$0xff]   ;;  %v1189_v17 = vld [vmem:[%s1840_s14 + $0x44] ss:$8 sps:$4 sm:$0xff]  }
  0xa0   : > { %v1185_v14 = vld [vmem:[%s1840_s14 + $0x134] ss:$8 sps:$4 sm:$0xff]   ;;  %v1188_v16 = vld [vmem:[%s1840_s14 + $0x130] ss:$8 sps:$4 sm:$0xff]   ;;  %v1191_v18 = vld [vmem:[%s1840_s14 + $0x144] ss:$8 sps:$4 sm:$0xff]  }
  0xa1   : > { %695 = vmatpush1.bf16.msra.mxu0 %v1175_v7  ;;  %v1193_v19 = vld [vmem:[%s1840_s14 + $0x40] ss:$8 sps:$4 sm:$0xff]   ;;  %v1195_v21 = vld [vmem:[%s1840_s14 + $0x54] ss:$8 sps:$4 sm:$0xff]   ;;  %v1199_v23 = vld [vmem:[%s1840_s14 + $0x50] ss:$8 sps:$4 sm:$0xff]  }
  0xa2   : > { %736 = vmatpush1.bf16.msra.mxu1 %v1176_v8  ;;  %696 = vmatprep.subr.bf16.mxu0 %v1177_v9  ;;  %v1194_v20 = vld [vmem:[%s1840_s14 + $0x140] ss:$8 sps:$4 sm:$0xff]   ;;  %v1197_v22 = vld [vmem:[%s1840_s14 + $0x154] ss:$8 sps:$4 sm:$0xff]   ;;  %v1200_v24 = vld [vmem:[%s1840_s14 + $0x150] ss:$8 sps:$4 sm:$0xff]  }
  0xa3   : > { %737 = vmatprep.subr.bf16.mxu1 %v1179_v10  ;;  %v1201_v25 = vld [vmem:[%s1840_s14 + $0x64] ss:$8 sps:$4 sm:$0xff]   ;;  %v1205_v27 = vld [vmem:[%s1840_s14 + $0x60] ss:$8 sps:$4 sm:$0xff]   ;;  %v1207_v29 = vld [vmem:[%s1840_s14 + $0x74] ss:$8 sps:$4 sm:$0xff]  }
  0xa4   : > { %v1203_v26 = vld [vmem:[%s1840_s14 + $0x164] ss:$8 sps:$4 sm:$0xff]   ;;  %v1206_v28 = vld [vmem:[%s1840_s14 + $0x160] ss:$8 sps:$4 sm:$0xff]   ;;  %v1209_v30 = vld [vmem:[%s1840_s14 + $0x174] ss:$8 sps:$4 sm:$0xff]  }
  0xa5   : > { %697 = vmatpush1.bf16.msra.mxu0 %v1181_v11  ;;  %v1211_v31 = vld [vmem:[%s1840_s14 + $0x70] ss:$8 sps:$4 sm:$0xff]   ;;  %v1213_v33 = vld [vmem:[%s1840_s14 + $0x84] ss:$8 sps:$4 sm:$0xff]   ;;  %v1217_v35 = vld [vmem:[%s1840_s14 + $0x80] ss:$8 sps:$4 sm:$0xff]  }
  0xa6   : > { %738 = vmatpush1.bf16.msra.mxu1 %v1182_v12  ;;  %698 = vmatprep.subr.bf16.mxu0 %v1183_v13  ;;  %v1212_v32 = vld [vmem:[%s1840_s14 + $0x170] ss:$8 sps:$4 sm:$0xff]   ;;  %v1215_v34 = vld [vmem:[%s1840_s14 + $0x184] ss:$8 sps:$4 sm:$0xff]   ;;  %v1218_v36 = vld [vmem:[%s1840_s14 + $0x180] ss:$8 sps:$4 sm:$0xff]  }
  0xa7   : > { %739 = vmatprep.subr.bf16.mxu1 %v1185_v14  ;;  %v1219_v37 = vld [vmem:[%s1840_s14 + $0x94] ss:$8 sps:$4 sm:$0xff]   ;;  %v1223_v39 = vld [vmem:[%s1840_s14 + $0x90] ss:$8 sps:$4 sm:$0xff]   ;;  %v1225_v41 = vld [vmem:[%s1840_s14 + $0xa4] ss:$8 sps:$4 sm:$0xff]  }
  0xa8   : > { %v1221_v38 = vld [vmem:[%s1840_s14 + $0x194] ss:$8 sps:$4 sm:$0xff]   ;;  %v1224_v40 = vld [vmem:[%s1840_s14 + $0x190] ss:$8 sps:$4 sm:$0xff]   ;;  %v1227_v42 = vld [vmem:[%s1840_s14 + $0x1a4] ss:$8 sps:$4 sm:$0xff]  }
  0xa9   : > { %699 = vmatpush1.bf16.msra.mxu0 %v1187_v15  ;;  %v1229_v43 = vld [vmem:[%s1840_s14 + $0xa0] ss:$8 sps:$4 sm:$0xff]   ;;  %v1231_v45 = vld [vmem:[%s1840_s14 + $0xb4] ss:$8 sps:$4 sm:$0xff]   ;;  %v1235_v51 = vld [vmem:[%s1840_s14 + $0xb0] ss:$8 sps:$4 sm:$0xff]  }
  0xaa   : > { %740 = vmatpush1.bf16.msra.mxu1 %v1188_v16  ;;  %700 = vmatprep.subr.bf16.mxu0 %v1189_v17  ;;  %v1230_v44 = vld [vmem:[%s1840_s14 + $0x1a0] ss:$8 sps:$4 sm:$0xff]   ;;  %v1233_v46 = vld [vmem:[%s1840_s14 + $0x1b4] ss:$8 sps:$4 sm:$0xff]   ;;  %v1236_v52 = vld [vmem:[%s1840_s14 + $0x1b0] ss:$8 sps:$4 sm:$0xff]  }
  0xab   : > { %741 = vmatprep.subr.bf16.mxu1 %v1191_v18  ;;  %v291_v47 = vld [vmem:[%s1826_s29 + $0x8] sm:$0xff]  ;;  %v293_v49 = vld [vmem:[%s1826_s29 + $0x18] sm:$0xff]  ;;  %v290_v5 = vld [vmem:[%s1826_s29] sm:$0xff]  ;;  %p1015_p10 = scmp.ne.s32.totalorder %s1489_s21, 2 }
  0xac   : > { %v295_v48 = vld [vmem:[%s1833_s12 + $0x8] sm:$0xff]  ;;  %v297_v50 = vld [vmem:[%s1833_s12 + $0x18] sm:$0xff]  ;;  %v294_v6 = vld [vmem:[%s1833_s12] sm:$0xff] }
  0xad   : > { %701 = vmatpush1.bf16.msra.mxu0 %v1193_v19  ;;  %v299_v53 = vsub.f32 %v291_v47, %v295_v48  ;;  %v301_v54 = vsub.f32 %v293_v49, %v297_v50  ;;  %v1237_v55 = vld [vmem:[%s1840_s14 + $0xc4] ss:$8 sps:$4 sm:$0xff]   ;;  %v1241_v59 = vld [vmem:[%s1840_s14 + $0xc0] ss:$8 sps:$4 sm:$0xff]   ;;  %v1243_v61 = vld [vmem:[%s1840_s14 + $0xd4] ss:$8 sps:$4 sm:$0xff]   ;;  %v298_v11 = vsub.f32 %v290_v5, %v294_v6 }
  0xae   : > { %742 = vmatpush1.bf16.msra.mxu1 %v1194_v20  ;;  %702 = vmatprep.subr.bf16.mxu0 %v1195_v21  ;;  %v1239_v56 = vld [vmem:[%s1840_s14 + $0x1c4] ss:$8 sps:$4 sm:$0xff]   ;;  %v1242_v60 = vld [vmem:[%s1840_s14 + $0x1c0] ss:$8 sps:$4 sm:$0xff]   ;;  %v1245_v62 = vld [vmem:[%s1840_s14 + $0x1d4] ss:$8 sps:$4 sm:$0xff]  }
  0xaf   : > { %743 = vmatprep.subr.bf16.mxu1 %v1197_v22  ;;  %v303_v57 = vpack.c.bf16 %v299_v53, %v299_v53  ;;  %v305_v58 = vpack.c.bf16 %v301_v54, %v301_v54  ;;  %v1247_v63 = vld [vmem:[%s1840_s14 + $0xd0] ss:$8 sps:$4 sm:$0xff]   ;;  %v1249_v1 = vld [vmem:[%s1840_s14 + $0xe4] ss:$8 sps:$4 sm:$0xff]   ;;  %v1253_v3 = vld [vmem:[%s1840_s14 + $0xe0] ss:$8 sps:$4 sm:$0xff]   ;;  %v302_v15 = vpack.c.bf16 %v298_v11, %v298_v11 }
  0xb0   : > { %v1248_v0 = vld [vmem:[%s1840_s14 + $0x1d0] ss:$8 sps:$4 sm:$0xff]   ;;  %v1251_v2 = vld [vmem:[%s1840_s14 + $0x1e4] ss:$8 sps:$4 sm:$0xff]   ;;  %v1254_v4 = vld [vmem:[%s1840_s14 + $0x1e0] ss:$8 sps:$4 sm:$0xff]  }
  0xb1   : > { %703 = vmatpush1.bf16.msra.mxu0 %v1199_v23  ;;  %724 = vmatprep.mubr.bf16.mxu0 %v303_v57  ;;  %v292_v7 = vld [vmem:[%s1826_s29 + $0x10] sm:$0xff]  ;;  %v307_v22 = vld [vmem:[%s1849_s3 + $0x8] sm:$0xff] }
  0xb2   : > { %744 = vmatpush1.bf16.msra.mxu1 %v1200_v24  ;;  %704 = vmatprep.subr.bf16.mxu0 %v1201_v25  ;;  %v296_v8 = vld [vmem:[%s1833_s12 + $0x10] sm:$0xff] }
  0xb3   : > { %745 = vmatprep.subr.bf16.mxu1 %v1203_v26  ;;  %765 = vmatprep.mubr.bf16.mxu1 %v305_v58  ;;  %v1255_v9 = vld [vmem:[%s1840_s14 + $0xf4] ss:$8 sps:$4 sm:$0xff]   ;;  %v300_v12 = vsub.f32 %v292_v7, %v296_v8  ;;  %v1259_v13 = vld [vmem:[%s1840_s14 + $0xf0] ss:$8 sps:$4 sm:$0xff]  }
  0xb4   : > { %v1257_v10 = vld [vmem:[%s1840_s14 + $0x1f4] ss:$8 sps:$4 sm:$0xff]   ;;  %v1260_v14 = vld [vmem:[%s1840_s14 + $0x1f0] ss:$8 sps:$4 sm:$0xff]  }
  0xb5   : > { %705 = vmatpush1.bf16.msra.mxu0 %v1205_v27  ;;  %v304_v16 = vpack.c.bf16 %v300_v12, %v300_v12  ;;  %v306_v18 = vld [vmem:[%s1849_s3] sm:$0xff] }
  0xb6   : > { %746 = vmatpush1.bf16.msra.mxu1 %v1206_v28  ;;  %706 = vmatprep.subr.bf16.mxu0 %v1207_v29 }
  0xb7   : > { %747 = vmatprep.subr.bf16.mxu1 %v1209_v30 }
  0xb9   : > { %707 = vmatpush1.bf16.msra.mxu0 %v1211_v31 }
  0xba   : > { %748 = vmatpush1.bf16.msra.mxu1 %v1212_v32  ;;  %708 = vmatprep.subr.bf16.mxu0 %v1213_v33 }
  0xbb   : > { %749 = vmatprep.subr.bf16.mxu1 %v1215_v34 }
  0xbd   : > { %709 = vmatpush1.bf16.msra.mxu0 %v1217_v35 }
  0xbe   : > { %750 = vmatpush1.bf16.msra.mxu1 %v1218_v36  ;;  %710 = vmatprep.subr.bf16.mxu0 %v1219_v37 }
  0xbf   : > { %751 = vmatprep.subr.bf16.mxu1 %v1221_v38 }
  0xc1   : > { %711 = vmatpush1.bf16.msra.mxu0 %v1223_v39 }
  0xc2   : > { %752 = vmatpush1.bf16.msra.mxu1 %v1224_v40  ;;  %712 = vmatprep.subr.bf16.mxu0 %v1225_v41 }
  0xc3   : > { %753 = vmatprep.subr.bf16.mxu1 %v1227_v42 }
  0xc5   : > { %713 = vmatpush1.bf16.msra.mxu0 %v1229_v43 }
  0xc6   : > { %754 = vmatpush1.bf16.msra.mxu1 %v1230_v44  ;;  %714 = vmatprep.subr.bf16.mxu0 %v1231_v45 }
  0xc7   : > { %755 = vmatprep.subr.bf16.mxu1 %v1233_v46 }
  0xc9   : > { %715 = vmatpush1.bf16.msra.mxu0 %v1235_v51 }
  0xca   : > { %756 = vmatpush1.bf16.msra.mxu1 %v1236_v52  ;;  %716 = vmatprep.subr.bf16.mxu0 %v1237_v55 }
  0xcb   : > { %757 = vmatprep.subr.bf16.mxu1 %v1239_v56 }
  0xcd   : > { %717 = vmatpush1.bf16.msra.mxu0 %v1241_v59 }
  0xce   : > { %758 = vmatpush1.bf16.msra.mxu1 %v1242_v60  ;;  %718 = vmatprep.subr.bf16.mxu0 %v1243_v61 }
  0xcf   : > { %759 = vmatprep.subr.bf16.mxu1 %v1245_v62 }
  0xd1   : > { %719 = vmatpush1.bf16.msra.mxu0 %v1247_v63 }
  0xd2   : > { %760 = vmatpush1.bf16.msra.mxu1 %v1248_v0  ;;  %720 = vmatprep.subr.bf16.mxu0 %v1249_v1 }
  0xd3   : > { %761 = vmatprep.subr.bf16.mxu1 %v1251_v2 }
  0xd5   : > { %721 = vmatpush1.bf16.msra.mxu0 %v1253_v3 }
  0xd6   : > { %762 = vmatpush1.bf16.msra.mxu1 %v1254_v4  ;;  %722 = vmatprep.subr.bf16.mxu0 %v1255_v9 }
  0xd7   : > { %763 = vmatprep.subr.bf16.mxu1 %v1257_v10 }
  0xd9   : > { %723 = vmatpush1.bf16.msra.mxu0 %v1259_v13 }
  0xda   : > { %764 = vmatpush1.bf16.msra.mxu1 %v1260_v14 }
  0xdc   : > { %725 = vmatmul.mubr.bf16.vlgmr.msra.gmra.mrb[0].mxu0 %v302_v15 }
  0xdd   : > { %766 = vmatmul.mubr.bf16.vlgmr.msra.gmra.mrb[0].mxu1 %v304_v16 }
 0x1af   : > { %v726_v17 = vpop.f32.mrb[0].mxu0 }
 0x1b0   : > { %v767_v19 = vpop.f32.mrb[0].mxu1  ;;  %v728_v21 = vpop.f32.mrb[1].mxu0  ;;  %781 = sbr.rel (%p1015_p10) target bundleno = 449 (0x1c1), region = 52 }
 0x1b1   : > { %v768_v20 = vadd.f32 %v767_v19, %v726_v17  ;;  %v769_v23 = vpop.f32.mrb[1].mxu1  ;;  %v730_v25 = vpop.f32.mrb[2].mxu0 }
 0x1b2   : > { %v770_v24 = vadd.f32 %v769_v23, %v728_v21  ;;  %v771_v26 = vpop.f32.mrb[2].mxu1  ;;  %v731_v28 = vpop.f32.mrb[3].mxu0 }
 0x1b3   : > { %v774_v27 = vadd.f32 %v768_v20, %v306_v18  ;;  %v772_v29 = vpop.f32.mrb[3].mxu1 }
 0x1b4   : > { %v775_v30 = vadd.f32 %v770_v24, %v307_v22 }
 0x1b5   : > { %776 = vst [vmem:[%s1849_s3] sm:$0xff] %v774_v27 }
 0x1b6   : > { %777 = vst [vmem:[%s1849_s3 + $0x8] sm:$0xff] %v775_v30 }
 0x1bc   : > { %v782_v31 = vld [vmem:[%s1849_s3] sm:$0xff] }
 0x1bd   : > { %v783_v32 = vld [vmem:[%s1849_s3 + $0x8] sm:$0xff]  ;;  %v784_v33 = vand.u32 2147483647, %v782_v31 }
 0x1be   : > { %v785_v34 = vand.u32 2147483647, %v783_v32 }
 0x1bf   : > { %786 = vst [vmem:[%s1849_s3] sm:$0xff] %v784_v33 }
 0x1c0   : > { %787 = vst [vmem:[%s1849_s3 + $0x8] sm:$0xff] %v785_v34 }
 0x1c1 PF: > { %s2062_s7 = sld [smem:[#allocation22_spill]]  ;;  %s1024_s30 = sshll.u32 %s1493_s22, 8 }
 0x1c2   : > { %s2063_s21 = sld [smem:[#allocation25_spill]]  ;;  %s803_s1 = sshll.u32 %s1849_s3, 4  ;;  %s804_s1 = int_to_ptr.vmem [resolvable:$true] %s803_s1 }
 0x1c3   : > { %s789_s24 = scalar_lea.sflag [#allocation4], %s276_s26  ;;  %s1351_s5 = scalar_lea.vmem %s804_s1, 256 }
 0x1c4   : > { %p1352_p13 = scmp.ne.s32.totalorder %s804_s1, %s1351_s5  ;;  %s1514_s28 = smov [#allocation8]  }
 0x1c5   : > { %s1355_s18 = sshll.u32 %s1514_s28, 4  ;;  %s1356_s18 = int_to_ptr.vmem [resolvable:$false] %s1355_s18 }
 0x1c6   : > { %s1357_s29 = scalar_lea.vmem %s1356_s18, 512  ;;  %p1358_p5 = scmp.lt.s32.totalorder %s804_s1, %s1356_s18 }
 0x1c7   : > { %p2065_p6 = scmp.ne.s32.totalorder %s2062_s7, 0  ;;  %p1359_p11 = scmp.lt.s32.totalorder %s1357_s29, %s1351_s5 }
 0x1c8   : > { %s2064_s27 = smov %s2063_s21  ;;  %s1939_s23 = scalar_lea.hbm %s2063_s21, %s1024_s30 }
 0x1c9   : > { %p1353_p12 = pnand %p1352_p13, %p2065_p6  ;;  %p1360_p3 = por %p1359_p11, %p1358_p5 }
 0x1cb   : > { %p1354_p4 = pneg %p1353_p12 }
 0x1cd   : > { %p1361_p7 = pnand %p1360_p3, %p1354_p4 }
 0x1cf   : > { %1364 = shalt.err (!%p1361_p7)
}
 0x1d0   : > { %s1365_s22 = scalar_lea.hbm %s1939_s23, 256  ;;  %s1369_s12 = scalar_lea.hbm %s2064_s27, 512 }
 0x1d1   : > { %p1366_p8 = scmp.ne.s32.totalorder %s1939_s23, %s1365_s22  ;;  %p1370_p0 = scmp.lt.u32.totalorder %s1939_s23, %s2064_s27 }
 0x1d2   : > { %p1371_p2 = scmp.lt.u32.totalorder %s1369_s12, %s1365_s22  ;;  %p1373_p13 = scmp.lt.u32.totalorder %s1365_s22, %s1939_s23 }
 0x1d3   : > { %p1367_p1 = pnand %p1366_p8, %p2065_p6 }
 0x1d4   : > { %p1372_p10 = por %p1371_p2, %p1370_p0 }
 0x1d5   : > { %p1368_p9 = pneg %p1367_p1 }
 0x1d6   : > { %p1374_p12 = por %p1373_p13, %p1372_p10 }
 0x1d8   : > { %p1375_p4 = pnand %p1374_p12, %p1368_p9 }
 0x1da   : > { %1378 = shalt.err (!%p1375_p4)
}
 0x1db   : > { %1031 = dma.vmem_to_hbm [thread:$0]  (%p2065_p6), %s804_s1, 256, %s1939_s23, %s789_s24  }
 0x1dc PF: > { %s2066_s14 = sld [smem:[#allocation13_spill]]  ;;  %s2067_s26 = sld [smem:[#allocation23_spill]] }
 0x1dd   : > { %p1048_p5 = scmp.ge.s32.totalorder %s1505_s25, 2 }
 0x1e2   : > { %s815_s9 = sand.u32 1, %s2066_s14   ;;  %p2068_p11 = scmp.ne.s32.totalorder %s2067_s26, 0 }
 0x1e3   : > { %s816_s3 = scalar_lea.sflag [#allocation4], %s815_s9 }
 0x1e4   : > { %p1044_p3 = pnand %p1048_p5, %p2068_p11 }
 0x1e6   : > { %1448 = dma.done.wait (!%p1044_p3), %s816_s3, 256  }
 0x1e7   : > { %1450 = vsyncadd (!%p1044_p3), %s816_s3, 4294967040  ;;  %s22_s25 = sadd.s32 1, %s1505_s25   ;;  %s2070_s7 = sld [smem:[#allocation14_spill]] }
 0x1e8   : > { %p1966_p7 = scmp.ge.s32.totalorder %s22_s25, 8   ;;  %s2071_s14 = sld [smem:[#allocation21_spill]] }
 0x1e9   : > { %s2072_s10 = sld [smem:[#allocation20_spill]]  ;;  %s2073_s6 = sld [smem:[#allocation19_spill]] }
 0x1ea   : > { %s2074_s21 = sld [smem:[#allocation15_spill]]  ;;  %s2075_s22 = sld [smem:[#allocation16_spill]] }
 0x1eb   : > { %s2076_s23 = sld [smem:[#allocation17_spill]]  ;;  %s2077_s24 = sld [smem:[#allocation18_spill]] }
 0x1ec   : > { %s2078_s12 = smov %s1457_s13  ;;  %s2080_s15 = smov %s1469_s16 }
 0x1ed   : > { %s2079_s13 = smov %s2070_s7  ;;  %s2081_s16 = smov %s1473_s17 }
 0x1ee   : > { %s2083_s18 = smov %s1481_s19  ;;  %s2084_s19 = smov %s1485_s20 }
 0x1ef   : > { %s2082_s17 = smov %s2072_s10  ;;  %s2085_s20 = smov %s2073_s6 }
 0x1f0   :  { %21 = sbr.rel (!%p1966_p7) target bundleno = 15 (0xf), region = 109 }
 0x1f7   :  { %821 = vsyncpa [#allocation3], 1 }
 0x1f8   :  { %823 = vsyncpa [#allocation3 + $0x1], 1 }
 0x1f9   :  { %824 = vsyncpa [#allocation6], 1 }
 0x1fa   :  { %826 = vsyncpa [#allocation6 + $0x1], 1 }
 0x1fb   :  { %827 = vsyncpa [#allocation4], 1 }
 0x1fc   :  { %829 = vsyncpa [#allocation4 + $0x1], 1 }

</bundles_post_ra>
